<compile_context>
chip_gen: v7x
topology: tpu7x:2x2x1
jax: 0.10.0
libtpu: 0.0.40
codegen_flags: <defaults>
</compile_context>

<pallas_src>
import functools

import jax
import jax.numpy as jnp
from jax.experimental import pallas as pl
from jax.experimental.pallas import tpu as pltpu

_INV_SQRT2 = 0.7071067811865476


def _mlp_kernel(x_ref, w1_ref, b1_ref, w2_ref, b2_ref, o_ref):
    # x_ref:  (1, Cin, T)      pixels on the lane axis
    # w1_ref: (Hid, Cin)       b1_ref: (Hid, 1)
    # w2_ref: (Cout, Hid)      b2_ref: (Cout, 1)
    # o_ref:  (1, Cout, T)
    x = x_ref[0]                                                   # (Cin, T)
    h = jnp.dot(w1_ref[...], x, preferred_element_type=jnp.float32)
    h = h + b1_ref[...].astype(jnp.float32)                        # (Hid, T) f32
    # exact GELU (erf-based), matching torch.nn.GELU default; done in f32
    h = 0.5 * h * (1.0 + jax.lax.erf(h * _INV_SQRT2))
    y = jnp.dot(w2_ref[...].astype(jnp.float32), h,
                preferred_element_type=jnp.float32)
    y = y + b2_ref[...].astype(jnp.float32)                        # (Cout, T)
    o_ref[0] = y.astype(o_ref.dtype)


def mlp_casvit(x_nchw, w1, b1, w2, b2, *, hw_tile=None,
               vmem_budget_bytes=24 << 20):
    """x_nchw: (N, Cin, H, W); w1: (Hid, Cin, 1, 1); b1: (Hid,);
    w2: (Cout, Hid, 1, 1); b2: (Cout,).  Returns (N, Cout, H, W)."""
    N, C, H, W = x_nchw.shape
    hid = w1.shape[0]
    cout = w2.shape[0]
    HW = H * W
    itemsize = jnp.dtype(x_nchw.dtype).itemsize

    # Free reshape: NCHW -> (N, C, H*W).  Pixels land on the lane axis.
    xm = x_nchw.reshape(N, C, HW)

    # Minimal lane padding only: next multiple of 128 (not a tile multiple).
    HW128 = pl.cdiv(HW, 128) * 128

    # --- Tile sizing -------------------------------------------------------
    # VMEM bytes per pixel column in flight: double-buffered x + out slabs
    # plus the f32 (Hid, tile) hidden/GELU intermediate (counted twice for
    # headroom on temporaries).  Budgeted well below v7x's 64 MiB VMEM.
    bytes_per_col = 2 * (C + cout) * itemsize + 2 * hid * 4
    tile_cap = max(128, (vmem_budget_bytes // bytes_per_col) // 128 * 128)
    if hw_tile is not None:
        # User-supplied tiles are forced to a 128 multiple (lane-dense stores).
        tile_cap = min(tile_cap, max(128, (hw_tile // 128) * 128))

    # Number of pixel tiles per image; keep >= 2 total grid steps so both
    # TensorCores on v7x get work (no-op on v5e/v6e: 1 TC).
    n_tiles = max(1, pl.cdiv(HW128, tile_cap))
    if N * n_tiles < 2:
        n_tiles = 2
    tile = pl.cdiv(HW128, n_tiles * 128) * 128
    HW_pad = n_tiles * tile

    # Only pad if we truly must (HW not already a 128/tile multiple).
    if HW_pad != HW:
        xm = jnp.pad(xm, ((0, 0), (0, 0), (0, HW_pad - HW)))

    w1m = w1.reshape(hid, C)          # (Hid, Cin) -- no transpose needed
    w2m = w2.reshape(cout, hid)       # (Cout, Hid)
    b1c = b1.reshape(hid, 1)
    b2c = b2.reshape(cout, 1)

    grid = (N, n_tiles)

    cost = pl.CostEstimate(
        flops=2 * N * HW_pad * (C * hid + hid * cout),
        transcendentals=N * HW_pad * hid,
        bytes_accessed=itemsize * (N * HW_pad * (C + cout)
                                   + hid * C + cout * hid + hid + cout),
    )

    out = pl.pallas_call(
        _mlp_kernel,
        out_shape=jax.ShapeDtypeStruct((N, cout, HW_pad), x_nchw.dtype),
        grid_spec=pltpu.PrefetchScalarGridSpec(
            num_scalar_prefetch=0,
            grid=grid,
            in_specs=[
                pl.BlockSpec((1, C, tile), lambda n, p: (n, 0, p)),   # x slab
                pl.BlockSpec((hid, C), lambda n, p: (0, 0)),          # W1 (full)
                pl.BlockSpec((hid, 1), lambda n, p: (0, 0)),          # b1
                pl.BlockSpec((cout, hid), lambda n, p: (0, 0)),       # W2 (full)
                pl.BlockSpec((cout, 1), lambda n, p: (0, 0)),         # b2
            ],
            out_specs=pl.BlockSpec((1, cout, tile), lambda n, p: (n, 0, p)),
        ),
        compiler_params=pltpu.CompilerParams(
            dimension_semantics=("parallel", "parallel"),
            # Raised scoped-VMEM limit: covers the enlarged tiles on v5e's
            # 16 MiB default while staying under v7x's 64 MiB physical VMEM.
            vmem_limit_bytes=48 << 20,
        ),
        cost_estimate=cost,
    )(xm, w1m, b1c, w2m, b2c)

    # (N, Cout, HW_pad) -> NCHW.  Slice only if we actually padded.
    if HW_pad != HW:
        out = out[:, :, :HW]
    return out.reshape(N, cout, H, W)


def _reference(x_nchw, w1, b1, w2, b2):
    # pure-JAX reference of the PyTorch forward (1x1 convs == channel matmuls)
    N, C, H, W = x_nchw.shape
    hid, cout = w1.shape[0], w2.shape[0]
    xm = x_nchw.reshape(N, C, H * W)
    h = jnp.einsum('hc,ncp->nhp', w1.reshape(hid, C), xm) + b1.reshape(1, hid, 1)
    h = 0.5 * h * (1.0 + jax.lax.erf(h * _INV_SQRT2))
    y = jnp.einsum('oh,nhp->nop', w2.reshape(cout, hid), h) + b2.reshape(1, cout, 1)
    return y.reshape(N, cout, H, W)


if __name__ == "__main__":
    # Module config: in_features=4, hidden_features=8, out_features=4, drop=0.0
    N, Cin, H, W = 2, 4, 16, 16
    hidden, Cout = 8, 4

    key = jax.random.PRNGKey(0)
    kx, k1, kb1, k2, kb2 = jax.random.split(key, 5)

    x = jax.random.normal(kx, (N, Cin, H, W), dtype=jnp.float32)
    # deterministic synthetic parameters (shapes match nn.Conv2d 1x1 weights)
    w1 = jax.random.normal(k1, (hidden, Cin, 1, 1), dtype=jnp.float32) * 0.1
    b1 = jax.random.normal(kb1, (hidden,), dtype=jnp.float32) * 0.1
    w2 = jax.random.normal(k2, (Cout, hidden, 1, 1), dtype=jnp.float32) * 0.1
    b2 = jax.random.normal(kb2, (Cout,), dtype=jnp.float32) * 0.1

    fn = jax.jit(functools.partial(mlp_casvit))
    y = fn(x, w1, b1, w2, b2)
    jax.block_until_ready(y)

    y_ref = _reference(x, w1, b1, w2, b2)
    assert y.shape == (N, Cout, H, W)
    assert jnp.allclose(y, y_ref, atol=1e-5, rtol=1e-5)

    print("KERNEL_OK")
</pallas_src>

<mosaic_0001>
module attributes {stable_mosaic.version = 11 : i64} {
  func.func @_mlp_kernel(%arg0: i32, %arg1: i32, %arg2: memref<1x4x256xf32, #tpu.memory_space<vmem>>, %arg3: memref<8x4xf32, #tpu.memory_space<vmem>>, %arg4: memref<8x1xf32, #tpu.memory_space<vmem>>, %arg5: memref<4x8xf32, #tpu.memory_space<vmem>>, %arg6: memref<4x1xf32, #tpu.memory_space<vmem>>, %arg7: memref<1x4x256xf32, #tpu.memory_space<vmem>>) attributes {dimension_semantics = [#tpu.dimension_semantics<parallel>, #tpu.dimension_semantics<parallel>], iteration_bounds = array<i64: 2, 1>, scalar_prefetch = 0 : i64, scratch_operands = 0 : i64, tpu.core_type = #tpu.core_type<tc>, window_params = [{transform_indices = @transform_0, window_bounds = array<i64: 1, 4, 256>}, {pipeline_mode = #tpu.pipeline_mode<synchronous>, transform_indices = @transform_1, window_bounds = array<i64: 8, 4>}, {pipeline_mode = #tpu.pipeline_mode<synchronous>, transform_indices = @transform_2, window_bounds = array<i64: 8, 1>}, {pipeline_mode = #tpu.pipeline_mode<synchronous>, transform_indices = @transform_3, window_bounds = array<i64: 4, 8>}, {pipeline_mode = #tpu.pipeline_mode<synchronous>, transform_indices = @transform_4, window_bounds = array<i64: 4, 1>}, {transform_indices = @transform_5, window_bounds = array<i64: 1, 4, 256>}]} {
    %c0 = arith.constant 0 : index
    %c0_0 = arith.constant 0 : index
    %c0_1 = arith.constant 0 : index
    %0 = vector.load %arg2[%c0, %c0_0, %c0_1] : memref<1x4x256xf32, #tpu.memory_space<vmem>>, vector<1x4x256xf32>
    %1 = vector.shape_cast %0 : vector<1x4x256xf32> to vector<4x256xf32>
    %c0_2 = arith.constant 0 : index
    %c0_3 = arith.constant 0 : index
    %2 = vector.load %arg3[%c0_2, %c0_3] : memref<8x4xf32, #tpu.memory_space<vmem>>, vector<8x4xf32>
    %cst = arith.constant dense<0.000000e+00> : vector<8x256xf32>
    %3 = tpu.matmul %2, %1, %cst {dimension_numbers = #tpu.dot_dimension_numbers<[1], [0], [0], [1], [0, 0, 1, 1], [], []>} : vector<8x4xf32>, vector<4x256xf32>, vector<8x256xf32> -> vector<8x256xf32>
    %c0_4 = arith.constant 0 : index
    %c0_5 = arith.constant 0 : index
    %4 = vector.load %arg4[%c0_4, %c0_5] : memref<8x1xf32, #tpu.memory_space<vmem>>, vector<8x1xf32>
    %5 = vector.broadcast %4 : vector<8x1xf32> to vector<8x256xf32>
    %6 = arith.addf %3, %5 : vector<8x256xf32>
    %cst_6 = arith.constant 5.000000e-01 : f32
    %7 = vector.broadcast %cst_6 : f32 to vector<8x256xf32>
    %8 = arith.mulf %7, %6 : vector<8x256xf32>
    %cst_7 = arith.constant 0.707106769 : f32
    %9 = vector.broadcast %cst_7 : f32 to vector<8x256xf32>
    %10 = arith.mulf %6, %9 : vector<8x256xf32>
    %11 = math.erf %10 : vector<8x256xf32>
    %cst_8 = arith.constant 1.000000e+00 : f32
    %12 = vector.broadcast %cst_8 : f32 to vector<8x256xf32>
    %13 = arith.addf %12, %11 : vector<8x256xf32>
    %14 = arith.mulf %8, %13 : vector<8x256xf32>
    %c0_9 = arith.constant 0 : index
    %c0_10 = arith.constant 0 : index
    %15 = vector.load %arg5[%c0_9, %c0_10] : memref<4x8xf32, #tpu.memory_space<vmem>>, vector<4x8xf32>
    %cst_11 = arith.constant dense<0.000000e+00> : vector<4x256xf32>
    %16 = tpu.matmul %15, %14, %cst_11 {dimension_numbers = #tpu.dot_dimension_numbers<[1], [0], [0], [1], [0, 0, 1, 1], [], []>} : vector<4x8xf32>, vector<8x256xf32>, vector<4x256xf32> -> vector<4x256xf32>
    %c0_12 = arith.constant 0 : index
    %c0_13 = arith.constant 0 : index
    %17 = vector.load %arg6[%c0_12, %c0_13] : memref<4x1xf32, #tpu.memory_space<vmem>>, vector<4x1xf32>
    %18 = vector.broadcast %17 : vector<4x1xf32> to vector<4x256xf32>
    %19 = arith.addf %16, %18 : vector<4x256xf32>
    %c0_14 = arith.constant 0 : index
    %c0_15 = arith.constant 0 : index
    %c0_16 = arith.constant 0 : index
    %20 = vector.load %arg7[%c0_14, %c0_15, %c0_16] : memref<1x4x256xf32, #tpu.memory_space<vmem>>, vector<1x4x256xf32>
    %21 = vector.shape_cast %20 : vector<1x4x256xf32> to vector<4x256xf32>
    %22 = vector.shape_cast %19 : vector<4x256xf32> to vector<1x4x256xf32>
    tpu.vector_store %arg7[%c0_14, %c0_15, %c0_16], %22 {strides = array<i32>} : memref<1x4x256xf32, #tpu.memory_space<vmem>>, vector<1x4x256xf32>,
    return
  }
  func.func @transform_0(%arg0: i32, %arg1: i32) -> (i32, i32, i32) {
    %c0_i32 = arith.constant 0 : i32
    %c0_i32_0 = arith.constant 0 : i32
    return %arg0, %c0_i32, %arg1 : i32, i32, i32
  }
  func.func @transform_1(%arg0: i32, %arg1: i32) -> (i32, i32) {
    %c0_i32 = arith.constant 0 : i32
    %c0_i32_0 = arith.constant 0 : i32
    %c0_i32_1 = arith.constant 0 : i32
    return %c0_i32, %c0_i32_0 : i32, i32
  }
  func.func @transform_2(%arg0: i32, %arg1: i32) -> (i32, i32) {
    %c0_i32 = arith.constant 0 : i32
    %c0_i32_0 = arith.constant 0 : i32
    %c0_i32_1 = arith.constant 0 : i32
    return %c0_i32, %c0_i32_0 : i32, i32
  }
  func.func @transform_3(%arg0: i32, %arg1: i32) -> (i32, i32) {
    %c0_i32 = arith.constant 0 : i32
    %c0_i32_0 = arith.constant 0 : i32
    %c0_i32_1 = arith.constant 0 : i32
    return %c0_i32, %c0_i32_0 : i32, i32
  }
  func.func @transform_4(%arg0: i32, %arg1: i32) -> (i32, i32) {
    %c0_i32 = arith.constant 0 : i32
    %c0_i32_0 = arith.constant 0 : i32
    %c0_i32_1 = arith.constant 0 : i32
    return %c0_i32, %c0_i32_0 : i32, i32
  }
  func.func @transform_5(%arg0: i32, %arg1: i32) -> (i32, i32, i32) {
    %c0_i32 = arith.constant 0 : i32
    %c0_i32_0 = arith.constant 0 : i32
    return %arg0, %c0_i32, %arg1 : i32, i32, i32
  }
}

</mosaic_0001>

<bundles_post_ra>
// kernel: mlp_casvit.1
= control target key start
LH: loop header
LB: loop body
LE: loop exit
PB: predicated region body
PF: predicated region fallthrough
CT: control target
= control target key end

     0   :  { %s643_s18 = smov 0   ;;  %s645_s19 = smov 0   ;;  %s695_s0 = inlined_call_operand.vmem [shape: f32[2,4,256], index: 0, kind: input, shape index: {}]   ;;  %s696_s1 = inlined_call_operand.vmem [shape: f32[8,4], index: 1, kind: input, shape index: {}]   ;;  %s697_s2 = inlined_call_operand.vmem [shape: f32[8,1], index: 2, kind: input, shape index: {}]   ;;  %s698_s3 = inlined_call_operand.vmem [shape: f32[4,8], index: 3, kind: input, shape index: {}]   ;;  %s699_s4 = inlined_call_operand.vmem [shape: f32[4,1], index: 4, kind: input, shape index: {}]   ;;  %s700_s5 = inlined_call_operand.vmem [shape: f32[2,4,256], index: 5, kind: output, shape index: {}]  }
   0x1   :  { %s647_s20 = smov 0  }
   0x2 LB: > { %s27_s21 = sadd.s32 1, %s605_s19  ;;  %p542_p0 = scmp.ge.s32.totalorder %s609_s20, 1  ;;  %s609_s20 = sphi %s647_s20, %s15_s20   ;;  %s605_s19 = sphi %s645_s19, %s702_s19   ;;  %s601_s18 = sphi %s643_s18, %s701_s18  }
   0x3   : > { %p29_p1 = scmp.ge.s32.totalorder %s27_s21, 2  ;;  %p208_p2 = scmp.lt.s32.totalorder %s609_s20, 3 }
   0x5   : > { %s704_s21 = smov (%p29_p1, %s27_s21), 0  ;;  %p209_p3 = pnand %p542_p0, %p208_p2 }
   0x6   : > { %p245_p4 = scmp.lt.s32.totalorder (!%p209_p3), %s601_s18, 1  ;;  %v611_v0 = vmov (!%p209_p3), 0.0   ;;  %v612_v1 = vmov (!%p209_p3), 0   ;;  %v266_v2 = vld [vmem:[%s697_s2] sm:$0xff] (!%p209_p3)  ;;  %vm278_vm0 = vcmask (!%p209_p3), 1043456   ;;  %vm274_vm1 = vcmask (!%p209_p3), 31744  }
   0x7   : > { %212 = sbr.rel (%p209_p3) target bundleno = 474 (0x1da), region = 40  ;;  %347 = vmatprep.mubr.f32.mxu0 (!%p209_p3), %v611_v0  ;;  %581 = vset.pattern.permute.xlu0 (!%p209_p3), %v612_v1  ;;  %v365_v3 = vld [vmem:[%s699_s4] sm:$0xf] (!%p209_p3)  ;;  %vm371_vm2 = vcmask (!%p209_p3), 64512  }
   0x8   : > { %269 = vperm.xlu0 (!%p209_p3), %581, %v266_v2   ;;  %439 = vmatprep.mubr.f32.mxu1 (!%p209_p3), %v611_v0  ;;  %v265_v6 = vld [vmem:[%s696_s1] sm:$0xff] (!%p209_p3) }
   0x9   : > { %v364_v22 = vld [vmem:[%s698_s3] sm:$0xf] (!%p209_p3) }
   0xc   : > { %368 = vperm.xlu0 (!%p209_p3), %581, %v365_v3  }
   0xe   : > { %s706_s18 = smov (!%p245_p4, %s601_s18), 1 }
   0xf   : > { %s553_s26 = sshll.u32 %s706_s18, 3 }
  0x10   : > { %s252_s29 = scalar_lea.vmem %s695_s0, %s553_s26  ;;  %s262_s11 = scalar_lea.vmem %s700_s5, %s553_s26 }
  0x11   : > { %v264_v4 = vld [vmem:[%s252_s29] sm:$0xff] }
  0x12   : > { %v273_v5 = vcombine.high %v264_v4, %v264_v4 }
  0x14   : > { %547 = vmatprep.subr.msk.mxu0 %vm278_vm0, %v273_v5 }
  0x15   : > { %548 = vmatpush1.msk.msra.mxu0 %vm278_vm0, %v264_v4 }
  0x16   : > { %549 = vmatmul.mubr.msk.f32.vlgmr.msra.gmra.mrb[0].mxu0 %vm274_vm1, %v265_v6 }
  0x87   : > { %v270_v7 = vpop.permute.xlu0 %269 }
  0x8b   : > { %v369_v23 = vpop.permute.xlu0 %368 }
  0xe9   : > { %v349_v8 = vpop.f32.mrb[0].mxu0 }
  0xea   : > { %v350_v9 = vadd.f32 %v349_v8, %v270_v7  ;;  %v351_v10 = vpop.f32.mrb[1].mxu0 }
  0xeb   : > { %v352_v11 = vadd.f32 %v351_v10, %v270_v7 }
  0xec   : > { %v356_v12 = vmul.f32 0.70710677, %v350_v9  ;;  %v354_v19 = vmul.f32 0.5, %v350_v9 }
  0xed   : > { %v357_v13 = vmul.f32 0.70710677, %v352_v11  ;;  %v355_v17 = vmul.f32 0.5, %v352_v11 }
  0xee   : > { %583 = verf.f32 %v356_v12 }
  0xef   : > { %585 = verf.f32 %v357_v13 }
  0xf8   : > { %v584_v14 = vpop.eup %583 }
  0xf9   : > { %v586_v15 = vpop.eup %585  ;;  %v360_v16 = vadd.f32 1.0, %v584_v14 }
  0xfa   : > { %v361_v18 = vadd.f32 1.0, %v586_v15 }
  0xfb   : > { %v362_v21 = vmul.f32 %v360_v16, %v354_v19 }
  0xfc   : > { %v363_v20 = vmul.f32 %v361_v18, %v355_v17 }
  0xfe   : > { %375 = vmatprep.subr.mxu1 %v363_v20 }
  0xff   : > { %376 = vmatpush1.msra.mxu1 %v362_v21 }
 0x100   : > { %550 = vmatmul.mubr.msk.f32.vlgmr.msra.gmra.mrb[0].mxu1 %vm371_vm2, %v364_v22 }
 0x1d3   : > { %v441_v24 = vpop.f32.mrb[0].mxu1 }
 0x1d4   : > { %v442_v25 = vadd.f32 %v441_v24, %v369_v23  ;;  %v443_v26 = vpop.f32.mrb[1].mxu1 }
 0x1d5   : > { %v444_v27 = vadd.f32 %v443_v26, %v369_v23 }
 0x1d7   : > { %v448_v28 = vcombine.low %v442_v25, %v444_v27 }
 0x1d9   : > { %450 = vst [vmem:[%s262_s11] sm:$0xff] %v448_v28 }
 0x1da PF: > { %s15_s20 = sadd.s32 1, %s609_s20   ;;  %s701_s18 = smov %s605_s19 }
 0x1db   : > { %p12_p5 = scmp.ge.s32.totalorder %s15_s20, 4   ;;  %s702_s19 = smov %s704_s21 }
 0x1dd   :  { %14 = sbr.rel (!%p12_p5) target bundleno = 2 (0x2), region = 70 }

</bundles_post_ra>
